<compile_context>
chip_gen: v5e
topology: v5e:2x2
jax: 0.10.0
libtpu: 0.0.40
codegen_flags: <defaults>
</compile_context>

<pallas_src>
import functools

import numpy as np
import jax
import jax.numpy as jnp
from jax import lax
from jax.experimental import pallas as pl
from jax.experimental.pallas import tpu as pltpu


def _nt_xent_kernel(zi_ref, zjh_ref, rowpart_ref, colsum_ref, colmax_ref,
                    *, batch_size, temperature, tile_m, mm_dtype, use_fixed_shift):
    """One (TM, B) row tile of the cross-view similarity block S.

    Per-tile partial outputs (combined by the wrapper):
      rowpart[r]     = rowLSE(S)_r - 2 * S[r, r]                 (TM, 1)
      colsum[i,0,c]  = sum_r exp(S[r, c] - colmax[i, 0, c])      (1, 1, B)
      colmax[i,0,c]  = LSE shift used for column c in this tile  (1, 1, B)
    """
    b = batch_size
    tm = tile_m
    inv_t = jnp.float32(1.0 / temperature)

    # ---- normalize this z_i row tile (f32 math; v5e has no bf16 VPU/EUP path) ----
    zi = zi_ref[...].astype(jnp.float32)                                      # (TM, D)
    inv_ni = lax.rsqrt(jnp.maximum(jnp.sum(zi * zi, axis=-1, keepdims=True),
                                   jnp.float32(1e-8)))
    zi_n = zi * inv_ni                                                        # unit rows
    zi_hat = (zi_n * inv_t).astype(mm_dtype)     # fold 1/temperature into the MXU operand

    # S[r, c] = sim(z_i[r0 + r], z_j[c]) / t  -- trans_b contraction, no transpose copy.
    s = lax.dot_general(zi_hat, zjh_ref[...],
                        dimension_numbers=(((1,), (1,)), ((), ())),
                        preferred_element_type=jnp.float32)                   # (TM, B)

    # ---- positives: diag S[r, r0 + r] via a row-wise dot (no iota/where passes) ----
    r0 = pl.multiple_of(pl.program_id(0) * tm, tm)
    zj_diag = zjh_ref[pl.ds(r0, tm), :].astype(jnp.float32)                   # (TM, D)
    diag = jnp.sum(zi_n * zj_diag, axis=-1, keepdims=True) * inv_t            # (TM, 1)

    if use_fixed_shift:
        # |cos| <= 1 => |S| <= 1/t: a fixed shift can neither overflow nor (for
        # temperature >= ~0.05) underflow, so ONE exp pass feeds both reductions.
        shift = inv_t
        e = jnp.exp(s - shift)                                                # (TM, B)
        row_lse = shift + jnp.log(jnp.sum(e, axis=-1, keepdims=True))         # (TM, 1)
        # Column partial sums: a single cross-sublane reduce of the already-computed e.
        # (Could also be routed through the MXU as ones(1,TM) @ e if XLU ever binds.)
        colsum_ref[...] = jnp.sum(e, axis=0, keepdims=True).reshape(1, 1, b)
        colmax_ref[...] = jnp.full(colmax_ref.shape, shift, dtype=jnp.float32)
    else:
        # Tiny-temperature fallback: classic max-shifted LSE (two exp passes).
        row_max = jnp.max(s, axis=-1, keepdims=True)                          # (TM, 1)
        row_lse = row_max + jnp.log(jnp.sum(jnp.exp(s - row_max),
                                            axis=-1, keepdims=True))
        col_max = jnp.max(s, axis=0, keepdims=True)                           # (1, B)
        colsum_ref[...] = jnp.sum(jnp.exp(s - col_max), axis=0,
                                  keepdims=True).reshape(1, 1, b)
        colmax_ref[...] = col_max.reshape(1, 1, b)

    rowpart_ref[...] = row_lse - 2.0 * diag                                   # (TM, 1)


def _pick_tile_m(b):
    """Row tile: >= 128 when B allows, capped so one (TM, B) f32 temp stays ~1-2 MiB."""
    if b <= 256:
        return b
    cap = 256 if b <= 2048 else (128 if b <= 4096 else 64)
    for tm in range(cap, 7, -8):
        if b % tm == 0:
            return tm
    return b          # awkward B: fall back to a single full-height tile


def _vmem_capacity_bytes():
    try:
        info = pltpu.get_tpu_info()
        return int(getattr(info, "vmem_capacity_bytes", 64 << 20))
    except Exception:
        return 64 << 20            # unknown generation: assume the tight (v7x) budget


def nt_xent_loss(z_i, z_j, temperature, *, tile_m=None, matmul_dtype=None,
                 fixed_shift=None):
    """Pallas implementation of NT_Xent.forward (world_size = 1)."""
    assert z_i.shape == z_j.shape and z_i.ndim == 2
    b, d = z_i.shape
    temperature = float(temperature)
    if tile_m is None:
        tile_m = _pick_tile_m(b)
    assert b % tile_m == 0, (b, tile_m)
    num_tiles = b // tile_m
    if fixed_shift is None:
        # |S| <= 1/t, so exp(S - 1/t) is in [exp(-2/t), 1]: safe for any SimCLR-range t.
        fixed_shift = temperature >= 0.05

    # MXU operand dtype: bf16 inputs stay bf16 (f32 accumulate).  For f32 inputs pass
    # matmul_dtype=jnp.bfloat16 to trade a little precision for MXU throughput (esp. v5e).
    if matmul_dtype is not None:
        mm_dtype = jnp.dtype(matmul_dtype)
    else:
        mm_dtype = jnp.bfloat16 if z_i.dtype == jnp.bfloat16 else jnp.float32

    # Normalize z_j ONCE here (tiny XLA op) so the kernel neither re-normalizes it per
    # grid step nor carries a (B, D) zj_hat scratch / serial pid==0 prologue.
    zj = z_j.astype(jnp.float32)
    inv_nj = lax.rsqrt(jnp.maximum(jnp.sum(zj * zj, axis=-1, keepdims=True),
                                   jnp.float32(1e-8)))
    zj_hat = (zj * inv_nj).astype(mm_dtype)                                   # (B, D)

    kernel = functools.partial(
        _nt_xent_kernel,
        batch_size=b, temperature=temperature, tile_m=tile_m,
        mm_dtype=mm_dtype, use_fixed_shift=fixed_shift)

    in_itemsize = jnp.dtype(z_i.dtype).itemsize
    mm_itemsize = jnp.dtype(mm_dtype).itemsize
    # z_i tiles (double-buffered) + resident zj_hat (x2: default pipeline buffering)
    # + staged partial-output blocks + live (TM, B) f32 temporaries (s, e) + slack.
    footprint = (2 * tile_m * d * in_itemsize
                 + 2 * b * d * mm_itemsize
                 + 2 * (2 * b + tile_m) * 4
                 + 2 * tile_m * b * 4
                 + (4 << 20))
    vmem_limit = int(min((_vmem_capacity_bytes() * 3) // 4,
                         max(32 << 20, footprint)))

    cost = pl.CostEstimate(
        flops=2 * b * b * d + 6 * b * d,
        transcendentals=(b * b if fixed_shift else 2 * b * b) + 4 * b,
        bytes_accessed=(b + tile_m) * d * in_itemsize + b * d * mm_itemsize
                       + (b + num_tiles * 2 * b) * 4)

    rowpart, colsum, colmax = pl.pallas_call(
        kernel,
        out_shape=(
            jax.ShapeDtypeStruct((b, 1), jnp.float32),             # rowLSE - 2*diag per row
            jax.ShapeDtypeStruct((num_tiles, 1, b), jnp.float32),  # per-tile column sums
            jax.ShapeDtypeStruct((num_tiles, 1, b), jnp.float32),  # per-tile column shifts
        ),
        grid_spec=pltpu.PrefetchScalarGridSpec(
            num_scalar_prefetch=0,
            grid=(num_tiles,),
            in_specs=[
                # z_i row tile: pipelined / double-buffered across the grid.
                pl.BlockSpec((tile_m, d), lambda i: (i, 0)),
                # zj_hat: full block, constant index -> fetched once, stays resident.
                # TODO(synk): pipeline_mode=pl.Buffered(1) would also drop its redundant
                # second pipeline buffer (pure VMEM saving, relevant for v7x's 64 MiB).
                pl.BlockSpec((b, d), lambda i: (0, 0)),
            ],
            out_specs=[
                pl.BlockSpec((tile_m, 1), lambda i: (i, 0)),
                pl.BlockSpec((1, 1, b), lambda i: (i, 0, 0)),
                pl.BlockSpec((1, 1, b), lambda i: (i, 0, 0)),
            ],
        ),
        compiler_params=pltpu.CompilerParams(
            # No cross-tile carried state -> the row-tile axis is truly parallel
            # (lets v7x shard it across both TensorCores; no-op on v5e/v6e).
            dimension_semantics=("parallel",),
            vmem_limit_bytes=vmem_limit,
        ),
        cost_estimate=cost,
    )(z_i, zj_hat)

    # Tiny O(num_tiles * B) combine of the per-tile partials (plain XLA ops).
    # With the fixed shift, colmax is constant and the exp factor is exactly 1.
    gmax = jnp.max(colmax, axis=0)                                            # (1, B)
    col_sum = jnp.sum(colsum * jnp.exp(colmax - gmax), axis=0)                # (1, B)
    col_lse_sum = jnp.sum(gmax + jnp.log(col_sum))
    return (jnp.sum(rowpart) + col_lse_sum) / jnp.float32(2 * b)


def _reference_loss(z_i, z_j, temperature):
    """Literal NumPy transcription of the PyTorch forward, for verification."""
    z = np.concatenate([z_i, z_j], axis=0)
    b = z_i.shape[0]
    n = 2 * b
    norms = np.linalg.norm(z, axis=-1)
    sim = (z @ z.T) / np.maximum(np.outer(norms, norms), 1e-8) / temperature
    sim_i_j = np.diagonal(sim, b)
    sim_j_i = np.diagonal(sim, -b)
    pos = np.concatenate([sim_i_j, sim_j_i]).reshape(n, 1)
    mask = np.ones((n, n), dtype=bool)
    np.fill_diagonal(mask, False)
    for i in range(b):
        mask[i, b + i] = False
        mask[b + i, i] = False
    mask[:b, :b] = False
    mask[b:, b:] = False
    neg = sim[mask].reshape(n, -1)
    logits = np.concatenate([pos, neg], axis=1)
    m = logits.max(axis=-1, keepdims=True)
    lse = m[:, 0] + np.log(np.exp(logits - m).sum(axis=-1))
    return float(np.sum(lse - logits[:, 0]) / n)


if __name__ == "__main__":
    key = jax.random.PRNGKey(0)
    k1, k2, k3, k4 = jax.random.split(key, 4)
    temperature = 0.5

    # Case 1: tiny single-tile problem (B=8, D=32), fixed-shift path.
    z_i = jax.random.normal(k1, (8, 32), dtype=jnp.float32)
    z_j = jax.random.normal(k2, (8, 32), dtype=jnp.float32)
    loss = jax.block_until_ready(nt_xent_loss(z_i, z_j, temperature))
    ref = _reference_loss(np.asarray(z_i), np.asarray(z_j), temperature)
    assert np.allclose(float(loss), ref, rtol=1e-4, atol=1e-4), (float(loss), ref)

    # Case 2: multi-tile parallel grid (B=16 in two row tiles of 8) -- exercises the
    # per-tile partial outputs and the wrapper-side column-LSE combine.
    z_i2 = jax.random.normal(k3, (16, 128), dtype=jnp.float32)
    z_j2 = jax.random.normal(k4, (16, 128), dtype=jnp.float32)
    loss2 = jax.block_until_ready(nt_xent_loss(z_i2, z_j2, temperature, tile_m=8))
    ref2 = _reference_loss(np.asarray(z_i2), np.asarray(z_j2), temperature)
    assert np.allclose(float(loss2), ref2, rtol=1e-4, atol=1e-4), (float(loss2), ref2)

    # Case 3: bf16 inputs (bf16 MXU operands, f32 accumulation); loose tolerance.
    z_i3 = z_i2.astype(jnp.bfloat16)
    z_j3 = z_j2.astype(jnp.bfloat16)
    loss3 = jax.block_until_ready(nt_xent_loss(z_i3, z_j3, temperature, tile_m=8))
    ref3 = _reference_loss(np.asarray(z_i3, dtype=np.float32),
                           np.asarray(z_j3, dtype=np.float32), temperature)
    assert np.allclose(float(loss3), ref3, rtol=5e-2, atol=5e-2), (float(loss3), ref3)

    # Case 4: very small temperature -> exercises the max-shifted fallback path.
    loss4 = jax.block_until_ready(nt_xent_loss(z_i2, z_j2, 0.02, tile_m=8))
    ref4 = _reference_loss(np.asarray(z_i2), np.asarray(z_j2), 0.02)
    assert np.allclose(float(loss4), ref4, rtol=1e-4, atol=1e-3), (float(loss4), ref4)

    print("KERNEL_OK")
</pallas_src>

<mosaic_0001>
module attributes {stable_mosaic.version = 11 : i64} {
  func.func @_nt_xent_kernel(%arg0: i32, %arg1: memref<8x32xf32, #tpu.memory_space<vmem>>, %arg2: memref<8x32xf32, #tpu.memory_space<vmem>>, %arg3: memref<8x1xf32, #tpu.memory_space<vmem>>, %arg4: memref<1x1x8xf32, #tpu.memory_space<vmem>>, %arg5: memref<1x1x8xf32, #tpu.memory_space<vmem>>) attributes {dimension_semantics = [#tpu.dimension_semantics<parallel>], iteration_bounds = array<i64: 1>, scalar_prefetch = 0 : i64, scratch_operands = 0 : i64, tpu.core_type = #tpu.core_type<tc>, window_params = [{transform_indices = @transform_0, window_bounds = array<i64: 8, 32>}, {pipeline_mode = #tpu.pipeline_mode<synchronous>, transform_indices = @transform_1, window_bounds = array<i64: 8, 32>}, {transform_indices = @transform_2, window_bounds = array<i64: 8, 1>}, {transform_indices = @transform_3, window_bounds = array<i64: 1, 1, 8>}, {transform_indices = @transform_4, window_bounds = array<i64: 1, 1, 8>}]} {
    %c0 = arith.constant 0 : index
    %c0_0 = arith.constant 0 : index
    %0 = vector.load %arg1[%c0, %c0_0] : memref<8x32xf32, #tpu.memory_space<vmem>>, vector<8x32xf32>
    %1 = arith.mulf %0, %0 : vector<8x32xf32>
    %cst = arith.constant dense<0.000000e+00> : vector<8xf32>
    %2 = vector.multi_reduction <add>, %1, %cst [1] : vector<8x32xf32> to vector<8xf32>
    %3 = vector.shape_cast %2 : vector<8xf32> to vector<8x1xf32>
    %cst_1 = arith.constant 9.99999993E-9 : f32
    %4 = vector.broadcast %cst_1 : f32 to vector<8x1xf32>
    %5 = arith.maximumf %3, %4 : vector<8x1xf32>
    %6 = math.rsqrt %5 : vector<8x1xf32>
    %7 = vector.broadcast %6 : vector<8x1xf32> to vector<8x32xf32>
    %8 = arith.mulf %0, %7 : vector<8x32xf32>
    %cst_2 = arith.constant 2.000000e+00 : f32
    %9 = vector.broadcast %cst_2 : f32 to vector<8x32xf32>
    %10 = arith.mulf %8, %9 : vector<8x32xf32>
    %c0_3 = arith.constant 0 : index
    %c0_4 = arith.constant 0 : index
    %11 = vector.load %arg2[%c0_3, %c0_4] : memref<8x32xf32, #tpu.memory_space<vmem>>, vector<8x32xf32>
    %cst_5 = arith.constant dense<0.000000e+00> : vector<8x8xf32>
    %12 = tpu.matmul %10, %11, %cst_5 {dimension_numbers = #tpu.dot_dimension_numbers<[1], [1], [0], [0], [0, 0, 1, 0], [], []>} : vector<8x32xf32>, vector<8x32xf32>, vector<8x8xf32> -> vector<8x8xf32>
    %c8_i32 = arith.constant 8 : i32
    %13 = arith.muli %arg0, %c8_i32 : i32
    %14 = tpu.assume_multiple %13, 8 : i32
    %15 = arith.index_cast %14 : i32 to index
    %c0_6 = arith.constant 0 : index
    %16 = vector.load %arg2[%15, %c0_6] : memref<8x32xf32, #tpu.memory_space<vmem>>, vector<8x32xf32>
    %17 = arith.mulf %8, %16 : vector<8x32xf32>
    %cst_7 = arith.constant dense<0.000000e+00> : vector<8xf32>
    %18 = vector.multi_reduction <add>, %17, %cst_7 [1] : vector<8x32xf32> to vector<8xf32>
    %19 = vector.shape_cast %18 : vector<8xf32> to vector<8x1xf32>
    %cst_8 = arith.constant 2.000000e+00 : f32
    %20 = vector.broadcast %cst_8 : f32 to vector<8x1xf32>
    %21 = arith.mulf %19, %20 : vector<8x1xf32>
    %cst_9 = arith.constant 2.000000e+00 : f32
    %22 = vector.broadcast %cst_9 : f32 to vector<8x8xf32>
    %23 = arith.subf %12, %22 : vector<8x8xf32>
    %24 = math.exp %23 : vector<8x8xf32>
    %cst_10 = arith.constant dense<0.000000e+00> : vector<8xf32>
    %25 = vector.multi_reduction <add>, %24, %cst_10 [1] : vector<8x8xf32> to vector<8xf32>
    %26 = vector.shape_cast %25 : vector<8xf32> to vector<8x1xf32>
    %27 = math.log %26 : vector<8x1xf32>
    %cst_11 = arith.constant 2.000000e+00 : f32
    %28 = vector.broadcast %cst_11 : f32 to vector<8x1xf32>
    %29 = arith.addf %28, %27 : vector<8x1xf32>
    %cst_12 = arith.constant dense<0.000000e+00> : vector<8xf32>
    %30 = vector.multi_reduction <add>, %24, %cst_12 [0] : vector<8x8xf32> to vector<8xf32>
    %31 = vector.shape_cast %30 : vector<8xf32> to vector<1x8xf32>
    %32 = vector.shape_cast %31 : vector<1x8xf32> to vector<1x1x8xf32>
    %c0_13 = arith.constant 0 : index
    %c0_14 = arith.constant 0 : index
    %c0_15 = arith.constant 0 : index
    %33 = vector.load %arg4[%c0_13, %c0_14, %c0_15] : memref<1x1x8xf32, #tpu.memory_space<vmem>>, vector<1x1x8xf32>
    tpu.vector_store %arg4[%c0_13, %c0_14, %c0_15], %32 {strides = array<i32>} : memref<1x1x8xf32, #tpu.memory_space<vmem>>, vector<1x1x8xf32>,
    %cst_16 = arith.constant 2.000000e+00 : f32
    %34 = vector.broadcast %cst_16 : f32 to vector<1x1x8xf32>
    %c0_17 = arith.constant 0 : index
    %c0_18 = arith.constant 0 : index
    %c0_19 = arith.constant 0 : index
    %35 = vector.load %arg5[%c0_17, %c0_18, %c0_19] : memref<1x1x8xf32, #tpu.memory_space<vmem>>, vector<1x1x8xf32>
    tpu.vector_store %arg5[%c0_17, %c0_18, %c0_19], %34 {strides = array<i32>} : memref<1x1x8xf32, #tpu.memory_space<vmem>>, vector<1x1x8xf32>,
    %cst_20 = arith.constant 2.000000e+00 : f32
    %36 = vector.broadcast %cst_20 : f32 to vector<8x1xf32>
    %37 = arith.mulf %36, %21 : vector<8x1xf32>
    %38 = arith.subf %29, %37 : vector<8x1xf32>
    %c0_21 = arith.constant 0 : index
    %c0_22 = arith.constant 0 : index
    %39 = vector.load %arg3[%c0_21, %c0_22] : memref<8x1xf32, #tpu.memory_space<vmem>>, vector<8x1xf32>
    tpu.vector_store %arg3[%c0_21, %c0_22], %38 {strides = array<i32>} : memref<8x1xf32, #tpu.memory_space<vmem>>, vector<8x1xf32>,
    return
  }
  func.func @transform_0(%arg0: i32) -> (i32, i32) {
    %c0_i32 = arith.constant 0 : i32
    %c0_i32_0 = arith.constant 0 : i32
    return %arg0, %c0_i32 : i32, i32
  }
  func.func @transform_1(%arg0: i32) -> (i32, i32) {
    %c0_i32 = arith.constant 0 : i32
    %c0_i32_0 = arith.constant 0 : i32
    %c0_i32_1 = arith.constant 0 : i32
    return %c0_i32, %c0_i32_0 : i32, i32
  }
  func.func @transform_2(%arg0: i32) -> (i32, i32) {
    %c0_i32 = arith.constant 0 : i32
    %c0_i32_0 = arith.constant 0 : i32
    return %arg0, %c0_i32 : i32, i32
  }
  func.func @transform_3(%arg0: i32) -> (i32, i32, i32) {
    %c0_i32 = arith.constant 0 : i32
    %c0_i32_0 = arith.constant 0 : i32
    %c0_i32_1 = arith.constant 0 : i32
    return %arg0, %c0_i32, %c0_i32_0 : i32, i32, i32
  }
  func.func @transform_4(%arg0: i32) -> (i32, i32, i32) {
    %c0_i32 = arith.constant 0 : i32
    %c0_i32_0 = arith.constant 0 : i32
    %c0_i32_1 = arith.constant 0 : i32
    return %arg0, %c0_i32, %c0_i32_0 : i32, i32, i32
  }
}

</mosaic_0001>

<bundles_post_ra>
// kernel: tpu_custom_call.1
= control target key start
LH: loop header
LB: loop body
LE: loop exit
PB: predicated region body
PF: predicated region fallthrough
CT: control target
= control target key end

     0   :  { %10 = vsyncpa [#allocation3], 0  ;;  %s326_s0 = inlined_call_operand.hbm [shape: f32[8,32], index: 0, kind: input, shape index: {}]   ;;  %s327_s1 = inlined_call_operand.hbm [shape: f32[8,32], index: 1, kind: input, shape index: {}]   ;;  %s328_s2 = inlined_call_operand.vmem [shape: f32[8,1], index: 2, kind: output, shape index: {0}]   ;;  %s329_s3 = inlined_call_operand.hbm [shape: f32[1,1,8], index: 3, kind: output, shape index: {1}]   ;;  %s330_s4 = inlined_call_operand.hbm [shape: f32[1,1,8], index: 4, kind: output, shape index: {2}]  }
   0x1   :  { %11 = vsyncpa [#allocation6], 0 }
   0x2   :  { %12 = vsyncpa [#allocation4], 0 }
   0x3   :  { %13 = vsyncpa [#allocation9], 0  ;;  %s19_s17 = sshll.u32 %s326_s0, 4  ;;  %s277_s18 = smov [#allocation2]   ;;  %s20_s17 = int_to_ptr.hbm [resolvable:$true] %s19_s17 }
   0x4   :  { %s21_s19 = sshll.u32 %s277_s18, 4  ;;  %s30_s22 = sshll.u32 %s327_s1, 4  ;;  %s22_s19 = int_to_ptr.vmem [resolvable:$true] %s21_s19  ;;  %s31_s22 = int_to_ptr.hbm [resolvable:$true] %s30_s22 }
   0x5   :  { %24 = dma.hbm_to_vmem [thread:$0]  %s20_s17, 128, %s22_s19, [#allocation3]  }
   0x6   :  { %s278_s23 = smov [#allocation5]  }
   0x7   :  { %s32_s24 = sshll.u32 %s278_s23, 4  ;;  %s33_s24 = int_to_ptr.vmem [resolvable:$true] %s32_s24 }
   0x8   :  { %35 = dma.hbm_to_vmem [thread:$0]  %s31_s22, 128, %s33_s24, [#allocation6]  }
   0x9   :  { %269 = dma.done.wait [#allocation3], 128  }
   0xa   :  { %270 = vsyncadd [#allocation3], 4294967168 }
   0xb   :  { %271 = dma.done.wait [#allocation6], 128  }
   0xc   :  { %272 = vsyncadd [#allocation6], 4294967168  ;;  %v44_v0 = vld [vmem:[#allocation2] sm:$0xff]  ;;  %vm46_vm0 = vcmask 261120   ;;  %v63_v3 = vld [vmem:[#allocation5] sm:$0xff]  ;;  %vm101_vm4 = vcmask 64512  }
   0xd   :  { %v45_v1 = vmul.f32 %v44_v0, %v44_v0  ;;  %159 = vmatpush.xpose.msk.msra.mxu0 %vm46_vm0, %v63_v3  ;;  %s279_s0 = smov [#allocation7]   ;;  %s130_s27 = sshll.u32 %s329_s3, 4  ;;  %vm114_vm5 = vcmask 57344   ;;  %v281_v28 = vmov 2.0   ;;  %vm119_vm6 = vcmask 7168   ;;  %s131_s27 = int_to_ptr.hbm [resolvable:$true] %s130_s27 }
   0xe   :  { %s128_s1 = sshll.u32 %s279_s0, 4  ;;  %s280_s28 = smov [#allocation8]   ;;  %116 = vst.msk [vmem:[#allocation8] sm:$0x1] %vm114_vm5, %v281_v28  ;;  %s129_s1 = int_to_ptr.vmem [resolvable:$true] %s128_s1 }
   0xf   :  { %v47_v2 = vsel %vm46_vm0, %v45_v1, 0.0  ;;  %s139_s29 = sshll.u32 %s280_s28, 4  ;;  %s141_s6 = sshll.u32 %s330_s4, 4  ;;  %s140_s29 = int_to_ptr.vmem [resolvable:$true] %s139_s29  ;;  %s142_s6 = int_to_ptr.hbm [resolvable:$true] %s141_s6 }
  0x10   :  { %48 = vadd.xlane.f32.xlu0 %v47_v2  ;;  %144 = dma.vmem_to_hbm [thread:$0]  %s140_s29, 16, %s142_s6, [#allocation9]  }
  0x83   :  { %v49_v4 = vpop.xlane.xlu0 %48 }
  0x84   :  { %v50_v5 = vmax.f32 %v49_v4, 1e-08 }
  0x86   :  { %167 = vrsqrt.f32 %v50_v5  ;;  %vm57_vm2 = vweird.f32 %v50_v5 }
  0x8c   :  { %v168_v6 = vpop.eup %167 }
  0x8d   :  { %v52_v7 = vmul.f32 %v168_v6, %v50_v5  ;;  %vm58_vm1 = vweird.f32 %v168_v6 }
  0x8e   :  { %vm59_vm3 = vmor %vm57_vm2, %vm58_vm1 }
  0x8f   :  { %v53_v8 = vmul.f32 %v168_v6, %v52_v7 }
  0x91   :  { %v54_v9 = vmul.f32 0.5, %v53_v8 }
  0x93   :  { %v55_v10 = vsub.f32 1.5, %v54_v9 }
  0x95   :  { %v56_v11 = vmul.f32 %v168_v6, %v55_v10 }
  0x97   :  { %v60_v12 = vsel %vm59_vm3, %v168_v6, %v56_v11 }
  0x98   :  { %v61_v13 = vmul.f32 %v60_v12, %v44_v0 }
  0x9a   :  { %v62_v14 = vmul.f32 2.0, %v61_v13  ;;  %v93_v15 = vmul.f32 %v63_v3, %v61_v13 }
  0x9c   :  { %160 = vmatmul.msk.f32.vlgmr.msra.gmra.mxu0 %vm46_vm0, %v62_v14  ;;  %v94_v16 = vsel %vm46_vm0, %v93_v15, 0.0 }
  0x9d   :  { %95 = vadd.xlane.f32.xlu1 %v94_v16 }
 0x110   :  { %v96_v30 = vpop.xlane.xlu1 %95 }
 0x111   :  { %v97_v31 = vmul.f32 2.0, %v96_v30 }
 0x113   :  { %v117_v34 = vmul.f32 2.0, %v97_v31 }
 0x119   :  { %v87_v17 = vpop.f32.mrf.mxu0 }
 0x11a   :  { %v161_v18 = vadd.f32 -2.0, %v87_v17 }
 0x11c   :  { %v99_v19 = vmul.f32 1.442695, %v161_v18 }
 0x11e   :  { %169 = vpow2.f32 %v99_v19 }
 0x124   :  { %v170_v20 = vpop.eup %169 }
 0x125   :  { %v102_v21 = vsel %vm101_vm4, %v170_v20, 0.0 }
 0x126   :  { %103 = vadd.xlane.f32.xlu0 %v102_v21  ;;  %v108_v22 = vrot.slane %v102_v21, 4 }
 0x128   :  { %v109_v23 = vadd.f32 %v108_v22, %v102_v21 }
 0x12a   :  { %v110_v24 = vrot.slane %v109_v23, 2 }
 0x12c   :  { %v111_v25 = vadd.f32 %v110_v24, %v109_v23 }
 0x12e   :  { %v112_v26 = vrot.slane %v111_v25, 1 }
 0x130   :  { %v113_v27 = vadd.f32 %v112_v26, %v111_v25 }
 0x132   :  { %115 = vst.msk [vmem:[#allocation7] sm:$0x1] %vm114_vm5, %v113_v27 }
 0x133   :  { %133 = dma.vmem_to_hbm [thread:$0]  %s129_s1, 16, %s131_s27, [#allocation4]  }
 0x199   :  { %v104_v29 = vpop.xlane.xlu0 %103 }
 0x19a   :  { %171 = vlog2.f32 %v104_v29 }
 0x1a0   :  { %v172_v32 = vpop.eup %171 }
 0x1a1   :  { %v106_v33 = vmul.f32 0.6931472, %v172_v32 }
 0x1a3   :  { %v107_v35 = vadd.f32 2.0, %v106_v33 }
 0x1a5   :  { %v118_v36 = vsub.f32 %v107_v35, %v117_v34 }
 0x1a7   :  { %120 = vst.msk [vmem:[%s328_s2] sm:$0xff] %vm119_vm6, %v118_v36 }
 0x1a8   :  { %273 = dma.done.wait [#allocation4], 16  }
 0x1a9   :  { %274 = vsyncadd [#allocation4], 4294967280 }
 0x1aa   :  { %275 = dma.done.wait [#allocation9], 16  }
 0x1ab   :  { %276 = vsyncadd [#allocation9], 4294967280 }
 0x1ac   :  { %155 = vsyncpa [#allocation3], 1 }
 0x1ad   :  { %156 = vsyncpa [#allocation6], 1 }
 0x1ae   :  { %157 = vsyncpa [#allocation4], 1 }
 0x1af   :  { %158 = vsyncpa [#allocation9], 1 }

</bundles_post_ra>
